<compile_context>
chip_gen: v5e
topology: v5e:2x2
jax: 0.10.0
libtpu: 0.0.40
codegen_flags: <defaults>
</compile_context>

<pallas_src>
import jax
import jax.numpy as jnp
from jax.experimental import pallas as pl
from jax.experimental.pallas import tpu as pltpu

_MAX_TILE_BYTES = 4 * 1024 * 1024  # per-tile budget; 4 live buffers -> ~16 MiB


def _identity_kernel(x_ref, o_ref):
    # Whole-tile copy: one VMEM load + one VMEM store per grid step.
    o_ref[...] = x_ref[...]


def _lane_dense_2d(total: int, last_dim: int):
    """Pick (rows, cols) with cols a large multiple of 128 when possible."""
    for cols in (4096, 2048, 1024, 512, 256, 128):
        if total % cols == 0:
            return total // cols, cols
    # Fallback for sizes with no multiple-of-128 factor: keep it a single
    # full-extent block (correct, just not lane-dense).
    if last_dim > 0 and total % last_dim == 0:
        return total // last_dim, last_dim
    return 1, total


def _pick_row_tile(rows: int, cols: int, itemsize: int) -> int:
    """Largest sublane-aligned row tile that fits the per-tile byte budget."""
    # Packed-sublane minimum: 8 for f32, 16 for bf16, 32 for int8.
    sub = max(8, 32 // max(1, itemsize))
    if rows <= sub:
        return rows  # block == full rows dim; (8,128) rule satisfied trivially
    max_rows = max(sub, _MAX_TILE_BYTES // max(1, cols * itemsize))
    tr = min(rows, max_rows, 2048)
    tr -= tr % sub
    return max(tr, sub)


def identity(x: jax.Array) -> jax.Array:
    """Pallas implementation of Identity.forward(x) -> x (bit-exact copy)."""
    orig_shape = x.shape
    orig_dtype = x.dtype

    total = x.size
    if total == 0:
        return x  # nothing to copy

    last_dim = x.shape[-1] if x.ndim >= 1 else 1
    rows, cols = _lane_dense_2d(total, last_dim)
    x2 = x.reshape(rows, cols)

    tr = _pick_row_tile(rows, cols, x2.dtype.itemsize)
    grid = (pl.cdiv(rows, tr),)

    out2 = pl.pallas_call(
        _identity_kernel,
        out_shape=jax.ShapeDtypeStruct((rows, cols), orig_dtype),
        grid_spec=pltpu.PrefetchScalarGridSpec(
            num_scalar_prefetch=0,
            grid=grid,
            in_specs=[pl.BlockSpec((tr, cols), lambda i: (i, 0))],
            out_specs=pl.BlockSpec((tr, cols), lambda i: (i, 0)),
        ),
        compiler_params=pltpu.CompilerParams(
            # Independent row tiles: shard across TensorCores on v7x,
            # harmless (single TC) on v5e/v6e.
            dimension_semantics=("parallel",),
            # 4 double-buffered ~4 MiB tiles (<16 MiB) + headroom; safe on
            # every generation (physical VMEM >= 64 MiB).
            vmem_limit_bytes=32 * 1024 * 1024,
        ),
        # Pure memory traffic: read + write of the whole tensor.
        cost_estimate=pl.CostEstimate(
            flops=0, transcendentals=0, bytes_accessed=2 * x.nbytes
        ),
    )(x2)

    return out2.reshape(orig_shape)


if __name__ == "__main__":
    key = jax.random.PRNGKey(0)
    # Small NCHW input consistent with a backbone feature map.
    x = jax.random.normal(key, (2, 4, 16, 16), dtype=jnp.float32)

    y = identity(x)
    y = jax.block_until_ready(y)

    assert y.shape == x.shape, (y.shape, x.shape)
    assert y.dtype == x.dtype, (y.dtype, x.dtype)
    assert bool(jnp.array_equal(y, x)), "identity output mismatch"

    print("KERNEL_OK")
</pallas_src>

<mosaic_0001>
module attributes {stable_mosaic.version = 11 : i64} {
  func.func @_identity_kernel(%arg0: i32, %arg1: memref<1x2048xf32, #tpu.memory_space<vmem>>, %arg2: memref<1x2048xf32, #tpu.memory_space<vmem>>) attributes {dimension_semantics = [#tpu.dimension_semantics<parallel>], iteration_bounds = array<i64: 1>, scalar_prefetch = 0 : i64, scratch_operands = 0 : i64, tpu.core_type = #tpu.core_type<tc>, window_params = [{transform_indices = @transform_0, window_bounds = array<i64: 1, 2048>}, {transform_indices = @transform_1, window_bounds = array<i64: 1, 2048>}]} {
    %c0 = arith.constant 0 : index
    %c0_0 = arith.constant 0 : index
    %0 = vector.load %arg1[%c0, %c0_0] : memref<1x2048xf32, #tpu.memory_space<vmem>>, vector<1x2048xf32>
    %c0_1 = arith.constant 0 : index
    %c0_2 = arith.constant 0 : index
    %1 = vector.load %arg2[%c0_1, %c0_2] : memref<1x2048xf32, #tpu.memory_space<vmem>>, vector<1x2048xf32>
    tpu.vector_store %arg2[%c0_1, %c0_2], %0 {strides = array<i32>} : memref<1x2048xf32, #tpu.memory_space<vmem>>, vector<1x2048xf32>,
    return
  }
  func.func @transform_0(%arg0: i32) -> (i32, i32) {
    %c0_i32 = arith.constant 0 : i32
    %c0_i32_0 = arith.constant 0 : i32
    return %arg0, %c0_i32 : i32, i32
  }
  func.func @transform_1(%arg0: i32) -> (i32, i32) {
    %c0_i32 = arith.constant 0 : i32
    %c0_i32_0 = arith.constant 0 : i32
    return %arg0, %c0_i32 : i32, i32
  }
}

</mosaic_0001>

<bundles_post_ra>
// kernel: tpu_custom_call.1
= control target key start
LH: loop header
LB: loop body
LE: loop exit
PB: predicated region body
PF: predicated region fallthrough
CT: control target
= control target key end

     0   :  { %6 = vsyncpa [#allocation3], 0  ;;  %s116_s0 = inlined_call_operand.hbm [shape: f32[1,2048], index: 0, kind: input, shape index: {}]   ;;  %s117_s1 = inlined_call_operand.hbm [shape: f32[1,2048], index: 1, kind: output, shape index: {}]  }
   0x1   :  { %7 = vsyncpa [#allocation4], 0  ;;  %s13_s8 = sshll.u32 %s116_s0, 4  ;;  %s98_s9 = smov [#allocation2]   ;;  %s14_s8 = int_to_ptr.hbm [resolvable:$true] %s13_s8 }
   0x2   :  { %s15_s10 = sshll.u32 %s98_s9, 4  ;;  %s16_s10 = int_to_ptr.vmem [resolvable:$true] %s15_s10 }
   0x3   :  { %18 = dma.hbm_to_vmem [thread:$0]  %s14_s8, 256, %s16_s10, [#allocation3]  }
   0x4   :  { %94 = dma.done.wait [#allocation3], 256  }
   0x5   :  { %95 = vsyncadd [#allocation3], 4294967040  ;;  %s99_s11 = smov [#allocation5]   ;;  %s34_s15 = sshll.u32 %s117_s1, 4  ;;  %v23_v0 = vld [vmem:[#allocation2] sm:$0xff]  ;;  %v24_v1 = vld [vmem:[#allocation2 + $0x8] sm:$0xff]  ;;  %s35_s15 = int_to_ptr.hbm [resolvable:$true] %s34_s15 }
   0x6   :  { %s32_s12 = sshll.u32 %s99_s11, 4  ;;  %25 = vst [vmem:[#allocation5] sm:$0xff] %v23_v0  ;;  %s33_s12 = int_to_ptr.vmem [resolvable:$true] %s32_s12 }
   0x7   :  { %26 = vst [vmem:[#allocation5 + $0x8] sm:$0xff] %v24_v1 }
   0x8   :  { %37 = dma.vmem_to_hbm [thread:$0]  %s33_s12, 256, %s35_s15, [#allocation4]  }
   0x9   :  { %96 = dma.done.wait [#allocation4], 256  }
   0xa   :  { %97 = vsyncadd [#allocation4], 4294967040 }
   0xb   :  { %42 = vsyncpa [#allocation3], 1 }
   0xc   :  { %43 = vsyncpa [#allocation4], 1 }

</bundles_post_ra>
